<compile_context>
chip_gen: v5e
topology: v5e:2x2
jax: 0.10.0
libtpu: 0.0.40
codegen_flags: <defaults>
</compile_context>

<pallas_src>
import functools

import jax
import jax.numpy as jnp
from jax import lax
from jax.experimental import pallas as pl
from jax.experimental.pallas import tpu as pltpu

SUBLANES = 8  # padded batch = one sublane tile


def lstm_fc_kernel(x_ref, w_ref, fc_ref, out_ref, gx_ref, *,
                   seq_len, batch, hidden, in_rows):
    """Whole LSTM recurrence + final Linear, single invocation.

    x_ref  : (T*8, IP)     time-major inputs, batch padded to 8, constant-1 column
    w_ref  : (IP+4H, 4H)   rows [0:IP)   = [Wx (i/f/o cols *0.5) ; bias row ; 0]
                           rows [IP:IP+4H) = Wh zero-padded to 4H rows (same scaling)
    fc_ref : (pad, O)      rows [0:4H) = Wfc zero-padded, row 4H = b_fc
    out_ref: (B, O)
    gx_ref : (T*8, 4H)     VMEM scratch for the whole-sequence input projection
    """
    T, H, B = seq_len, hidden, batch
    BP = SUBLANES
    G = 4 * H
    IP = in_rows

    # Whole-sequence input projection (bias folded via the constant-1 x column):
    # one (T*8, IP) @ (IP, 4H) MXU matmul, stored to VMEM scratch so each step
    # reads one aligned (8, 4H) tile.
    gx_ref[...] = jnp.dot(x_ref[...], w_ref[0:IP, :],
                          preferred_element_type=jnp.float32)

    # Recurrent weights, zero-padded to (4H, 4H); hoisted out of the loop.
    wh = w_ref[IP:IP + G, :]

    # Full-width state: lanes [0:H) hold the real h / c; remaining lanes carry
    # bounded garbage that the zero rows of wh / wfc annihilate.
    h = jnp.zeros((BP, G), jnp.float32)
    c = jnp.zeros((BP, G), jnp.float32)

    for t in range(T):  # T small & static -> fully unrolled recurrence
        gates = gx_ref[t * BP:(t + 1) * BP, :] + jnp.dot(
            h, wh, preferred_element_type=jnp.float32)            # (8, 4H)

        # One transcendental over the whole vreg: i/f/o columns were pre-scaled
        # by 0.5, so 0.5*tanh(.)+0.5 gives sigmoid there; the g segment becomes
        # 0.5*tanh(g)+0.5 and is fixed up with scalar constants below.
        s = 0.5 * jnp.tanh(gates) + 0.5
        f = pltpu.roll(s, shift=3 * H, axis=1)   # f-gate -> lanes [0:H)
        g = pltpu.roll(s, shift=2 * H, axis=1)   # g-gate -> lanes [0:H)
        o = pltpu.roll(s, shift=1 * H, axis=1)   # o-gate -> lanes [0:H)

        c = f * c + s * (2.0 * g - 1.0)          # s holds the i-gate at lanes [0:H)
        h = o * jnp.tanh(c)

    # fc(h_T): zero-padded (4H, O) weight + bias row; only lanes [0:H) contribute.
    out = jnp.dot(h, fc_ref[0:G, :], preferred_element_type=jnp.float32) \
        + fc_ref[G:G + 1, :]
    out_ref[...] = out[0:B, :].astype(out_ref.dtype)


def prepare_params(params):
    """One-time parameter layout: transpose, gate-scale, pad, pack into 2 buffers."""
    w_ih = jnp.asarray(params["w_ih"], jnp.float32)   # (4H, I)
    w_hh = jnp.asarray(params["w_hh"], jnp.float32)   # (4H, H)
    b_ih = jnp.asarray(params["b_ih"], jnp.float32)   # (4H,)
    b_hh = jnp.asarray(params["b_hh"], jnp.float32)   # (4H,)
    w_fc = jnp.asarray(params["w_fc"], jnp.float32)   # (O, H)
    b_fc = jnp.asarray(params["b_fc"], jnp.float32)   # (O,)

    G, I = w_ih.shape
    H = G // 4
    O = w_fc.shape[0]
    IP = max(8, ((I + 1 + 7) // 8) * 8)               # input width + bias col, 8-aligned
    assert I + 1 <= IP

    # Pre-scale i/f/o gate columns by 0.5 so sigmoid falls out of one full-vreg tanh.
    col_scale = jnp.concatenate([jnp.full((2 * H,), 0.5, jnp.float32),
                                 jnp.ones((H,), jnp.float32),
                                 jnp.full((H,), 0.5, jnp.float32)])

    wbuf = jnp.zeros((IP + G, G), jnp.float32)
    wbuf = wbuf.at[:I, :].set(w_ih.T * col_scale[None, :])
    wbuf = wbuf.at[I, :].set((b_ih + b_hh) * col_scale)      # bias row (const-1 column)
    wbuf = wbuf.at[IP:IP + H, :].set(w_hh.T * col_scale[None, :])

    fc_rows = ((G + 1 + 7) // 8) * 8
    fcbuf = jnp.zeros((fc_rows, O), jnp.float32)
    fcbuf = fcbuf.at[:H, :].set(w_fc.T)
    fcbuf = fcbuf.at[G, :].set(b_fc)
    return wbuf, fcbuf


@jax.jit
def pendulum_rnn_forward(x, wbuf, fcbuf):
    """x: (B, T, I) float32 (batch_first, same as the PyTorch module)."""
    B, T, I = x.shape
    G = wbuf.shape[1]
    H = G // 4
    IP = wbuf.shape[0] - G
    O = fcbuf.shape[1]
    BP = SUBLANES

    # Per-call layout glue (tiny): time-major, batch padded to one sublane tile,
    # constant-1 column so the LSTM bias folds into the input projection.
    xt = jnp.transpose(x, (1, 0, 2)).astype(jnp.float32)      # (T, B, I)
    x_aug = jnp.zeros((T, BP, IP), jnp.float32)
    x_aug = x_aug.at[:, :B, :I].set(xt)
    x_aug = x_aug.at[:, :, I].set(1.0)
    x_flat = x_aug.reshape(T * BP, IP)

    kernel = functools.partial(lstm_fc_kernel, seq_len=T, batch=B,
                               hidden=H, in_rows=IP)

    # Single invocation, no grid: every operand lives whole in VMEM (~100 KiB total).
    return pl.pallas_call(
        kernel,
        out_shape=jax.ShapeDtypeStruct((B, O), jnp.float32),
        in_specs=[pl.BlockSpec(memory_space=pltpu.MemorySpace.VMEM)] * 3,
        out_specs=pl.BlockSpec(memory_space=pltpu.MemorySpace.VMEM),
        scratch_shapes=[pltpu.VMEM((T * BP, G), jnp.float32)],
    )(x_flat, wbuf, fcbuf)


def pendulum_rnn_reference(x, params):
    """Pure-JAX reference (matches torch.nn.LSTM + Linear semantics)."""
    w_ih, w_hh, b_ih, b_hh, w_fc, b_fc = (
        params["w_ih"], params["w_hh"], params["b_ih"], params["b_hh"],
        params["w_fc"], params["b_fc"])
    B, T, I = x.shape
    H = w_hh.shape[1]

    def step(carry, x_t):
        h, c = carry
        gates = x_t @ w_ih.T + b_ih + h @ w_hh.T + b_hh
        i_g = jax.nn.sigmoid(gates[:, 0 * H:1 * H])
        f_g = jax.nn.sigmoid(gates[:, 1 * H:2 * H])
        g_g = jnp.tanh(gates[:, 2 * H:3 * H])
        o_g = jax.nn.sigmoid(gates[:, 3 * H:4 * H])
        c = f_g * c + i_g * g_g
        h = o_g * jnp.tanh(c)
        return (h, c), None

    h0 = jnp.zeros((B, H), jnp.float32)
    c0 = jnp.zeros((B, H), jnp.float32)
    (h_last, _), _ = lax.scan(step, (h0, c0), jnp.transpose(x, (1, 0, 2)))
    return h_last @ w_fc.T + b_fc


def init_params(key, input_size, hidden_size, output_size):
    """Deterministic init matching PyTorch LSTM/Linear default U(-1/sqrt(H), 1/sqrt(H))."""
    ks = jax.random.split(key, 6)
    bound = 1.0 / jnp.sqrt(jnp.float32(hidden_size))

    def u(k, shape, b):
        return jax.random.uniform(k, shape, jnp.float32, -b, b)

    return {
        "w_ih": u(ks[0], (4 * hidden_size, input_size), bound),
        "w_hh": u(ks[1], (4 * hidden_size, hidden_size), bound),
        "b_ih": u(ks[2], (4 * hidden_size,), bound),
        "b_hh": u(ks[3], (4 * hidden_size,), bound),
        "w_fc": u(ks[4], (output_size, hidden_size), bound),
        "b_fc": u(ks[5], (output_size,), bound),
    }


if __name__ == "__main__":
    # shapes consistent with the module's forward: x is (batch, seq, input_size)
    B, T, I, H, O = 2, 8, 4, 32, 2

    key = jax.random.PRNGKey(0)
    k_x, k_p = jax.random.split(key)
    x = jax.random.normal(k_x, (B, T, I), jnp.float32)
    params = init_params(k_p, I, H, O)

    wbuf, fcbuf = prepare_params(params)                     # one-time layout work
    out = jax.block_until_ready(pendulum_rnn_forward(x, wbuf, fcbuf))
    ref = jax.block_until_ready(pendulum_rnn_reference(x, params))

    assert out.shape == (B, O)
    assert jnp.allclose(out, ref, atol=1e-4, rtol=1e-4), (out, ref)

    print("KERNEL_OK")
</pallas_src>

<mosaic_0001>
module attributes {stable_mosaic.version = 11 : i64} {
  func.func @lstm_fc_kernel(%arg0: memref<64x8xf32, #tpu.memory_space<vmem>>, %arg1: memref<136x128xf32, #tpu.memory_space<vmem>>, %arg2: memref<136x2xf32, #tpu.memory_space<vmem>>, %arg3: memref<2x2xf32, #tpu.memory_space<vmem>>, %arg4: memref<64x128xf32, #tpu.memory_space<vmem>>) attributes {dimension_semantics = [], scalar_prefetch = 0 : i64, scratch_operands = 1 : i64, tpu.core_type = #tpu.core_type<tc>} {
    %c0 = arith.constant 0 : index
    %c0_0 = arith.constant 0 : index
    %0 = vector.load %arg0[%c0, %c0_0] : memref<64x8xf32, #tpu.memory_space<vmem>>, vector<64x8xf32>
    %c0_1 = arith.constant 0 : index
    %c0_2 = arith.constant 0 : index
    %1 = vector.load %arg1[%c0_1, %c0_2] : memref<136x128xf32, #tpu.memory_space<vmem>>, vector<8x128xf32>
    %cst = arith.constant dense<0.000000e+00> : vector<64x128xf32>
    %2 = tpu.matmul %0, %1, %cst {dimension_numbers = #tpu.dot_dimension_numbers<[1], [0], [0], [1], [0, 0, 1, 1], [], []>} : vector<64x8xf32>, vector<8x128xf32>, vector<64x128xf32> -> vector<64x128xf32>
    %c0_3 = arith.constant 0 : index
    %c0_4 = arith.constant 0 : index
    %3 = vector.load %arg4[%c0_3, %c0_4] : memref<64x128xf32, #tpu.memory_space<vmem>>, vector<64x128xf32>
    tpu.vector_store %arg4[%c0_3, %c0_4], %2 {strides = array<i32>} : memref<64x128xf32, #tpu.memory_space<vmem>>, vector<64x128xf32>,
    %c8 = arith.constant 8 : index
    %c0_5 = arith.constant 0 : index
    %4 = vector.load %arg1[%c8, %c0_5] : memref<136x128xf32, #tpu.memory_space<vmem>>, vector<128x128xf32>
    %cst_6 = arith.constant 0.000000e+00 : f32
    %5 = vector.broadcast %cst_6 : f32 to vector<8x128xf32>
    %cst_7 = arith.constant 0.000000e+00 : f32
    %6 = vector.broadcast %cst_7 : f32 to vector<8x128xf32>
    %c0_8 = arith.constant 0 : index
    %c0_9 = arith.constant 0 : index
    %7 = vector.load %arg4[%c0_8, %c0_9] : memref<64x128xf32, #tpu.memory_space<vmem>>, vector<8x128xf32>
    %cst_10 = arith.constant dense<0.000000e+00> : vector<8x128xf32>
    %8 = tpu.matmul %5, %4, %cst_10 {dimension_numbers = #tpu.dot_dimension_numbers<[1], [0], [0], [1], [0, 0, 1, 1], [], []>} : vector<8x128xf32>, vector<128x128xf32>, vector<8x128xf32> -> vector<8x128xf32>
    %9 = arith.addf %7, %8 : vector<8x128xf32>
    %10 = math.tanh %9 : vector<8x128xf32>
    %cst_11 = arith.constant 5.000000e-01 : f32
    %11 = vector.broadcast %cst_11 : f32 to vector<8x128xf32>
    %12 = arith.mulf %11, %10 : vector<8x128xf32>
    %cst_12 = arith.constant 5.000000e-01 : f32
    %13 = vector.broadcast %cst_12 : f32 to vector<8x128xf32>
    %14 = arith.addf %12, %13 : vector<8x128xf32>
    %c96_i32 = arith.constant 96 : i32
    %15 = tpu.dynamic_rotate %14 by %c96_i32 dim 1 : vector<8x128xf32>, i32 -> vector<8x128xf32>
    %c64_i32 = arith.constant 64 : i32
    %16 = tpu.dynamic_rotate %14 by %c64_i32 dim 1 : vector<8x128xf32>, i32 -> vector<8x128xf32>
    %c32_i32 = arith.constant 32 : i32
    %17 = tpu.dynamic_rotate %14 by %c32_i32 dim 1 : vector<8x128xf32>, i32 -> vector<8x128xf32>
    %18 = arith.mulf %15, %6 : vector<8x128xf32>
    %cst_13 = arith.constant 2.000000e+00 : f32
    %19 = vector.broadcast %cst_13 : f32 to vector<8x128xf32>
    %20 = arith.mulf %19, %16 : vector<8x128xf32>
    %cst_14 = arith.constant 1.000000e+00 : f32
    %21 = vector.broadcast %cst_14 : f32 to vector<8x128xf32>
    %22 = arith.subf %20, %21 : vector<8x128xf32>
    %23 = arith.mulf %14, %22 : vector<8x128xf32>
    %24 = arith.addf %18, %23 : vector<8x128xf32>
    %25 = math.tanh %24 : vector<8x128xf32>
    %26 = arith.mulf %17, %25 : vector<8x128xf32>
    %c8_15 = arith.constant 8 : index
    %c0_16 = arith.constant 0 : index
    %27 = vector.load %arg4[%c8_15, %c0_16] : memref<64x128xf32, #tpu.memory_space<vmem>>, vector<8x128xf32>
    %cst_17 = arith.constant dense<0.000000e+00> : vector<8x128xf32>
    %28 = tpu.matmul %26, %4, %cst_17 {dimension_numbers = #tpu.dot_dimension_numbers<[1], [0], [0], [1], [0, 0, 1, 1], [], []>} : vector<8x128xf32>, vector<128x128xf32>, vector<8x128xf32> -> vector<8x128xf32>
    %29 = arith.addf %27, %28 : vector<8x128xf32>
    %30 = math.tanh %29 : vector<8x128xf32>
    %cst_18 = arith.constant 5.000000e-01 : f32
    %31 = vector.broadcast %cst_18 : f32 to vector<8x128xf32>
    %32 = arith.mulf %31, %30 : vector<8x128xf32>
    %cst_19 = arith.constant 5.000000e-01 : f32
    %33 = vector.broadcast %cst_19 : f32 to vector<8x128xf32>
    %34 = arith.addf %32, %33 : vector<8x128xf32>
    %c96_i32_20 = arith.constant 96 : i32
    %35 = tpu.dynamic_rotate %34 by %c96_i32_20 dim 1 : vector<8x128xf32>, i32 -> vector<8x128xf32>
    %c64_i32_21 = arith.constant 64 : i32
    %36 = tpu.dynamic_rotate %34 by %c64_i32_21 dim 1 : vector<8x128xf32>, i32 -> vector<8x128xf32>
    %c32_i32_22 = arith.constant 32 : i32
    %37 = tpu.dynamic_rotate %34 by %c32_i32_22 dim 1 : vector<8x128xf32>, i32 -> vector<8x128xf32>
    %38 = arith.mulf %35, %24 : vector<8x128xf32>
    %cst_23 = arith.constant 2.000000e+00 : f32
    %39 = vector.broadcast %cst_23 : f32 to vector<8x128xf32>
    %40 = arith.mulf %39, %36 : vector<8x128xf32>
    %cst_24 = arith.constant 1.000000e+00 : f32
    %41 = vector.broadcast %cst_24 : f32 to vector<8x128xf32>
    %42 = arith.subf %40, %41 : vector<8x128xf32>
    %43 = arith.mulf %34, %42 : vector<8x128xf32>
    %44 = arith.addf %38, %43 : vector<8x128xf32>
    %45 = math.tanh %44 : vector<8x128xf32>
    %46 = arith.mulf %37, %45 : vector<8x128xf32>
    %c16 = arith.constant 16 : index
    %c0_25 = arith.constant 0 : index
    %47 = vector.load %arg4[%c16, %c0_25] : memref<64x128xf32, #tpu.memory_space<vmem>>, vector<8x128xf32>
    %cst_26 = arith.constant dense<0.000000e+00> : vector<8x128xf32>
    %48 = tpu.matmul %46, %4, %cst_26 {dimension_numbers = #tpu.dot_dimension_numbers<[1], [0], [0], [1], [0, 0, 1, 1], [], []>} : vector<8x128xf32>, vector<128x128xf32>, vector<8x128xf32> -> vector<8x128xf32>
    %49 = arith.addf %47, %48 : vector<8x128xf32>
    %50 = math.tanh %49 : vector<8x128xf32>
    %cst_27 = arith.constant 5.000000e-01 : f32
    %51 = vector.broadcast %cst_27 : f32 to vector<8x128xf32>
    %52 = arith.mulf %51, %50 : vector<8x128xf32>
    %cst_28 = arith.constant 5.000000e-01 : f32
    %53 = vector.broadcast %cst_28 : f32 to vector<8x128xf32>
    %54 = arith.addf %52, %53 : vector<8x128xf32>
    %c96_i32_29 = arith.constant 96 : i32
    %55 = tpu.dynamic_rotate %54 by %c96_i32_29 dim 1 : vector<8x128xf32>, i32 -> vector<8x128xf32>
    %c64_i32_30 = arith.constant 64 : i32
    %56 = tpu.dynamic_rotate %54 by %c64_i32_30 dim 1 : vector<8x128xf32>, i32 -> vector<8x128xf32>
    %c32_i32_31 = arith.constant 32 : i32
    %57 = tpu.dynamic_rotate %54 by %c32_i32_31 dim 1 : vector<8x128xf32>, i32 -> vector<8x128xf32>
    %58 = arith.mulf %55, %44 : vector<8x128xf32>
    %cst_32 = arith.constant 2.000000e+00 : f32
    %59 = vector.broadcast %cst_32 : f32 to vector<8x128xf32>
    %60 = arith.mulf %59, %56 : vector<8x128xf32>
    %cst_33 = arith.constant 1.000000e+00 : f32
    %61 = vector.broadcast %cst_33 : f32 to vector<8x128xf32>
    %62 = arith.subf %60, %61 : vector<8x128xf32>
    %63 = arith.mulf %54, %62 : vector<8x128xf32>
    %64 = arith.addf %58, %63 : vector<8x128xf32>
    %65 = math.tanh %64 : vector<8x128xf32>
    %66 = arith.mulf %57, %65 : vector<8x128xf32>
    %c24 = arith.constant 24 : index
    %c0_34 = arith.constant 0 : index
    %67 = vector.load %arg4[%c24, %c0_34] : memref<64x128xf32, #tpu.memory_space<vmem>>, vector<8x128xf32>
    %cst_35 = arith.constant dense<0.000000e+00> : vector<8x128xf32>
    %68 = tpu.matmul %66, %4, %cst_35 {dimension_numbers = #tpu.dot_dimension_numbers<[1], [0], [0], [1], [0, 0, 1, 1], [], []>} : vector<8x128xf32>, vector<128x128xf32>, vector<8x128xf32> -> vector<8x128xf32>
    %69 = arith.addf %67, %68 : vector<8x128xf32>
    %70 = math.tanh %69 : vector<8x128xf32>
    %cst_36 = arith.constant 5.000000e-01 : f32
    %71 = vector.broadcast %cst_36 : f32 to vector<8x128xf32>
    %72 = arith.mulf %71, %70 : vector<8x128xf32>
    %cst_37 = arith.constant 5.000000e-01 : f32
    %73 = vector.broadcast %cst_37 : f32 to vector<8x128xf32>
    %74 = arith.addf %72, %73 : vector<8x128xf32>
    %c96_i32_38 = arith.constant 96 : i32
    %75 = tpu.dynamic_rotate %74 by %c96_i32_38 dim 1 : vector<8x128xf32>, i32 -> vector<8x128xf32>
    %c64_i32_39 = arith.constant 64 : i32
    %76 = tpu.dynamic_rotate %74 by %c64_i32_39 dim 1 : vector<8x128xf32>, i32 -> vector<8x128xf32>
    %c32_i32_40 = arith.constant 32 : i32
    %77 = tpu.dynamic_rotate %74 by %c32_i32_40 dim 1 : vector<8x128xf32>, i32 -> vector<8x128xf32>
    %78 = arith.mulf %75, %64 : vector<8x128xf32>
    %cst_41 = arith.constant 2.000000e+00 : f32
    %79 = vector.broadcast %cst_41 : f32 to vector<8x128xf32>
    %80 = arith.mulf %79, %76 : vector<8x128xf32>
    %cst_42 = arith.constant 1.000000e+00 : f32
    %81 = vector.broadcast %cst_42 : f32 to vector<8x128xf32>
    %82 = arith.subf %80, %81 : vector<8x128xf32>
    %83 = arith.mulf %74, %82 : vector<8x128xf32>
    %84 = arith.addf %78, %83 : vector<8x128xf32>
    %85 = math.tanh %84 : vector<8x128xf32>
    %86 = arith.mulf %77, %85 : vector<8x128xf32>
    %c32 = arith.constant 32 : index
    %c0_43 = arith.constant 0 : index
    %87 = vector.load %arg4[%c32, %c0_43] : memref<64x128xf32, #tpu.memory_space<vmem>>, vector<8x128xf32>
    %cst_44 = arith.constant dense<0.000000e+00> : vector<8x128xf32>
    %88 = tpu.matmul %86, %4, %cst_44 {dimension_numbers = #tpu.dot_dimension_numbers<[1], [0], [0], [1], [0, 0, 1, 1], [], []>} : vector<8x128xf32>, vector<128x128xf32>, vector<8x128xf32> -> vector<8x128xf32>
    %89 = arith.addf %87, %88 : vector<8x128xf32>
    %90 = math.tanh %89 : vector<8x128xf32>
    %cst_45 = arith.constant 5.000000e-01 : f32
    %91 = vector.broadcast %cst_45 : f32 to vector<8x128xf32>
    %92 = arith.mulf %91, %90 : vector<8x128xf32>
    %cst_46 = arith.constant 5.000000e-01 : f32
    %93 = vector.broadcast %cst_46 : f32 to vector<8x128xf32>
    %94 = arith.addf %92, %93 : vector<8x128xf32>
    %c96_i32_47 = arith.constant 96 : i32
    %95 = tpu.dynamic_rotate %94 by %c96_i32_47 dim 1 : vector<8x128xf32>, i32 -> vector<8x128xf32>
    %c64_i32_48 = arith.constant 64 : i32
    %96 = tpu.dynamic_rotate %94 by %c64_i32_48 dim 1 : vector<8x128xf32>, i32 -> vector<8x128xf32>
    %c32_i32_49 = arith.constant 32 : i32
    %97 = tpu.dynamic_rotate %94 by %c32_i32_49 dim 1 : vector<8x128xf32>, i32 -> vector<8x128xf32>
    %98 = arith.mulf %95, %84 : vector<8x128xf32>
    %cst_50 = arith.constant 2.000000e+00 : f32
    %99 = vector.broadcast %cst_50 : f32 to vector<8x128xf32>
    %100 = arith.mulf %99, %96 : vector<8x128xf32>
    %cst_51 = arith.constant 1.000000e+00 : f32
    %101 = vector.broadcast %cst_51 : f32 to vector<8x128xf32>
    %102 = arith.subf %100, %101 : vector<8x128xf32>
    %103 = arith.mulf %94, %102 : vector<8x128xf32>
    %104 = arith.addf %98, %103 : vector<8x128xf32>
    %105 = math.tanh %104 : vector<8x128xf32>
    %106 = arith.mulf %97, %105 : vector<8x128xf32>
    %c40 = arith.constant 40 : index
    %c0_52 = arith.constant 0 : index
    %107 = vector.load %arg4[%c40, %c0_52] : memref<64x128xf32, #tpu.memory_space<vmem>>, vector<8x128xf32>
    %cst_53 = arith.constant dense<0.000000e+00> : vector<8x128xf32>
    %108 = tpu.matmul %106, %4, %cst_53 {dimension_numbers = #tpu.dot_dimension_numbers<[1], [0], [0], [1], [0, 0, 1, 1], [], []>} : vector<8x128xf32>, vector<128x128xf32>, vector<8x128xf32> -> vector<8x128xf32>
    %109 = arith.addf %107, %108 : vector<8x128xf32>
    %110 = math.tanh %109 : vector<8x128xf32>
    %cst_54 = arith.constant 5.000000e-01 : f32
    %111 = vector.broadcast %cst_54 : f32 to vector<8x128xf32>
    %112 = arith.mulf %111, %110 : vector<8x128xf32>
    %cst_55 = arith.constant 5.000000e-01 : f32
    %113 = vector.broadcast %cst_55 : f32 to vector<8x128xf32>
    %114 = arith.addf %112, %113 : vector<8x128xf32>
    %c96_i32_56 = arith.constant 96 : i32
    %115 = tpu.dynamic_rotate %114 by %c96_i32_56 dim 1 : vector<8x128xf32>, i32 -> vector<8x128xf32>
    %c64_i32_57 = arith.constant 64 : i32
    %116 = tpu.dynamic_rotate %114 by %c64_i32_57 dim 1 : vector<8x128xf32>, i32 -> vector<8x128xf32>
    %c32_i32_58 = arith.constant 32 : i32
    %117 = tpu.dynamic_rotate %114 by %c32_i32_58 dim 1 : vector<8x128xf32>, i32 -> vector<8x128xf32>
    %118 = arith.mulf %115, %104 : vector<8x128xf32>
    %cst_59 = arith.constant 2.000000e+00 : f32
    %119 = vector.broadcast %cst_59 : f32 to vector<8x128xf32>
    %120 = arith.mulf %119, %116 : vector<8x128xf32>
    %cst_60 = arith.constant 1.000000e+00 : f32
    %121 = vector.broadcast %cst_60 : f32 to vector<8x128xf32>
    %122 = arith.subf %120, %121 : vector<8x128xf32>
    %123 = arith.mulf %114, %122 : vector<8x128xf32>
    %124 = arith.addf %118, %123 : vector<8x128xf32>
    %125 = math.tanh %124 : vector<8x128xf32>
    %126 = arith.mulf %117, %125 : vector<8x128xf32>
    %c48 = arith.constant 48 : index
    %c0_61 = arith.constant 0 : index
    %127 = vector.load %arg4[%c48, %c0_61] : memref<64x128xf32, #tpu.memory_space<vmem>>, vector<8x128xf32>
    %cst_62 = arith.constant dense<0.000000e+00> : vector<8x128xf32>
    %128 = tpu.matmul %126, %4, %cst_62 {dimension_numbers = #tpu.dot_dimension_numbers<[1], [0], [0], [1], [0, 0, 1, 1], [], []>} : vector<8x128xf32>, vector<128x128xf32>, vector<8x128xf32> -> vector<8x128xf32>
    %129 = arith.addf %127, %128 : vector<8x128xf32>
    %130 = math.tanh %129 : vector<8x128xf32>
    %cst_63 = arith.constant 5.000000e-01 : f32
    %131 = vector.broadcast %cst_63 : f32 to vector<8x128xf32>
    %132 = arith.mulf %131, %130 : vector<8x128xf32>
    %cst_64 = arith.constant 5.000000e-01 : f32
    %133 = vector.broadcast %cst_64 : f32 to vector<8x128xf32>
    %134 = arith.addf %132, %133 : vector<8x128xf32>
    %c96_i32_65 = arith.constant 96 : i32
    %135 = tpu.dynamic_rotate %134 by %c96_i32_65 dim 1 : vector<8x128xf32>, i32 -> vector<8x128xf32>
    %c64_i32_66 = arith.constant 64 : i32
    %136 = tpu.dynamic_rotate %134 by %c64_i32_66 dim 1 : vector<8x128xf32>, i32 -> vector<8x128xf32>
    %c32_i32_67 = arith.constant 32 : i32
    %137 = tpu.dynamic_rotate %134 by %c32_i32_67 dim 1 : vector<8x128xf32>, i32 -> vector<8x128xf32>
    %138 = arith.mulf %135, %124 : vector<8x128xf32>
    %cst_68 = arith.constant 2.000000e+00 : f32
    %139 = vector.broadcast %cst_68 : f32 to vector<8x128xf32>
    %140 = arith.mulf %139, %136 : vector<8x128xf32>
    %cst_69 = arith.constant 1.000000e+00 : f32
    %141 = vector.broadcast %cst_69 : f32 to vector<8x128xf32>
    %142 = arith.subf %140, %141 : vector<8x128xf32>
    %143 = arith.mulf %134, %142 : vector<8x128xf32>
    %144 = arith.addf %138, %143 : vector<8x128xf32>
    %145 = math.tanh %144 : vector<8x128xf32>
    %146 = arith.mulf %137, %145 : vector<8x128xf32>
    %c56 = arith.constant 56 : index
    %c0_70 = arith.constant 0 : index
    %147 = vector.load %arg4[%c56, %c0_70] : memref<64x128xf32, #tpu.memory_space<vmem>>, vector<8x128xf32>
    %cst_71 = arith.constant dense<0.000000e+00> : vector<8x128xf32>
    %148 = tpu.matmul %146, %4, %cst_71 {dimension_numbers = #tpu.dot_dimension_numbers<[1], [0], [0], [1], [0, 0, 1, 1], [], []>} : vector<8x128xf32>, vector<128x128xf32>, vector<8x128xf32> -> vector<8x128xf32>
    %149 = arith.addf %147, %148 : vector<8x128xf32>
    %150 = math.tanh %149 : vector<8x128xf32>
    %cst_72 = arith.constant 5.000000e-01 : f32
    %151 = vector.broadcast %cst_72 : f32 to vector<8x128xf32>
    %152 = arith.mulf %151, %150 : vector<8x128xf32>
    %cst_73 = arith.constant 5.000000e-01 : f32
    %153 = vector.broadcast %cst_73 : f32 to vector<8x128xf32>
    %154 = arith.addf %152, %153 : vector<8x128xf32>
    %c96_i32_74 = arith.constant 96 : i32
    %155 = tpu.dynamic_rotate %154 by %c96_i32_74 dim 1 : vector<8x128xf32>, i32 -> vector<8x128xf32>
    %c64_i32_75 = arith.constant 64 : i32
    %156 = tpu.dynamic_rotate %154 by %c64_i32_75 dim 1 : vector<8x128xf32>, i32 -> vector<8x128xf32>
    %c32_i32_76 = arith.constant 32 : i32
    %157 = tpu.dynamic_rotate %154 by %c32_i32_76 dim 1 : vector<8x128xf32>, i32 -> vector<8x128xf32>
    %158 = arith.mulf %155, %144 : vector<8x128xf32>
    %cst_77 = arith.constant 2.000000e+00 : f32
    %159 = vector.broadcast %cst_77 : f32 to vector<8x128xf32>
    %160 = arith.mulf %159, %156 : vector<8x128xf32>
    %cst_78 = arith.constant 1.000000e+00 : f32
    %161 = vector.broadcast %cst_78 : f32 to vector<8x128xf32>
    %162 = arith.subf %160, %161 : vector<8x128xf32>
    %163 = arith.mulf %154, %162 : vector<8x128xf32>
    %164 = arith.addf %158, %163 : vector<8x128xf32>
    %165 = math.tanh %164 : vector<8x128xf32>
    %166 = arith.mulf %157, %165 : vector<8x128xf32>
    %c0_79 = arith.constant 0 : index
    %c0_80 = arith.constant 0 : index
    %167 = vector.load %arg2[%c0_79, %c0_80] : memref<136x2xf32, #tpu.memory_space<vmem>>, vector<128x2xf32>
    %cst_81 = arith.constant dense<0.000000e+00> : vector<8x2xf32>
    %168 = tpu.matmul %166, %167, %cst_81 {dimension_numbers = #tpu.dot_dimension_numbers<[1], [0], [0], [1], [0, 0, 1, 1], [], []>} : vector<8x128xf32>, vector<128x2xf32>, vector<8x2xf32> -> vector<8x2xf32>
    %c128 = arith.constant 128 : index
    %c0_82 = arith.constant 0 : index
    %169 = vector.load %arg2[%c128, %c0_82] : memref<136x2xf32, #tpu.memory_space<vmem>>, vector<1x2xf32>
    %170 = vector.broadcast %169 : vector<1x2xf32> to vector<8x2xf32>
    %171 = arith.addf %168, %170 : vector<8x2xf32>
    %172 = vector.extract_strided_slice %171 {offsets = [0, 0], sizes = [2, 2], strides = [1, 1]} : vector<8x2xf32> to vector<2x2xf32>
    %c0_83 = arith.constant 0 : index
    %c0_84 = arith.constant 0 : index
    %173 = vector.load %arg3[%c0_83, %c0_84] : memref<2x2xf32, #tpu.memory_space<vmem>>, vector<2x2xf32>
    tpu.vector_store %arg3[%c0_83, %c0_84], %172 {strides = array<i32>} : memref<2x2xf32, #tpu.memory_space<vmem>>, vector<2x2xf32>,
    return
  }
}

</mosaic_0001>

<bundles_post_ra>
// kernel: pendulum_rnn_forward.1
= control target key start
LH: loop header
LB: loop body
LE: loop exit
PB: predicated region body
PF: predicated region fallthrough
CT: control target
= control target key end

     0   :  { %vm24_vm0 = vcmask 64512   ;;  %s900_s0 = inlined_call_operand.vmem [shape: f32[64,8], index: 0, kind: input, shape index: {}]   ;;  %s901_s1 = inlined_call_operand.vmem [shape: f32[136,128], index: 1, kind: input, shape index: {}]   ;;  %s902_s2 = inlined_call_operand.vmem [shape: f32[136,2], index: 2, kind: input, shape index: {}]   ;;  %s903_s3 = inlined_call_operand.hbm [shape: f32[2,2], index: 3, kind: output, shape index: {}]  }
   0x1   :  { %v582_v0 = vld [vmem:[%s901_s1 + $0x80] sm:$0xff]  ;;  %v587_v1 = vld [vmem:[%s901_s1 + $0x78] sm:$0xff]  ;;  %v594_v2 = vld [vmem:[%s901_s1 + $0x70] sm:$0xff] }
   0x2   :  { %115 = vmatpush.msra.mxu1 %v582_v0  ;;  %153 = vmatpush.msra.mxu2 %v582_v0  ;;  %v602_v3 = vld [vmem:[%s901_s1 + $0x68] sm:$0xff]  ;;  %v23_v4 = vld [vmem:[%s901_s1] sm:$0xff] }
   0x3   :  { %191 = vmatpush.msra.mxu3 %v582_v0  ;;  %v15_v5 = vld [vmem:[%s900_s0] sm:$0xff]  ;;  %64 = vmatpush.msra.mxu0 %v23_v4 }
   0x4   :  { %116 = vmatpush.msra.mxu1 %v587_v1  ;;  %154 = vmatpush.msra.mxu2 %v587_v1  ;;  %v616_v6 = vld [vmem:[%s901_s1 + $0x60] sm:$0xff] }
   0x5   :  { %192 = vmatpush.msra.mxu3 %v587_v1 }
   0x6   :  { %117 = vmatpush.msra.mxu1 %v594_v2  ;;  %155 = vmatpush.msra.mxu2 %v594_v2 }
   0x7   :  { %193 = vmatpush.msra.mxu3 %v594_v2 }
   0x8   :  { %8 = vsyncpa [#allocation4], 0  ;;  %118 = vmatpush.msra.mxu1 %v602_v3  ;;  %474 = vmatmul.msk.f32.vlgmr.msra.gmra.mxu0 %vm24_vm0, %v15_v5  ;;  %v624_v7 = vld [vmem:[%s901_s1 + $0x58] sm:$0xff]  ;;  %v633_v8 = vld [vmem:[%s901_s1 + $0x50] sm:$0xff]  ;;  %v554_v18 = vmov 0.0   ;;  %s556_s21 = smov 64  }
   0x9   :  { %156 = vmatpush.msra.mxu2 %v602_v3  ;;  %194 = vmatpush.msra.mxu3 %v602_v3  ;;  %v642_v9 = vld [vmem:[%s901_s1 + $0x48] sm:$0xff]  ;;  %v651_v10 = vld [vmem:[%s901_s1 + $0x40] sm:$0xff]  ;;  %v660_v11 = vld [vmem:[%s901_s1 + $0x38] sm:$0xff]  ;;  %s557_s22 = smov 96   ;;  %s558_s14 = smov [#allocation3]   ;;  %vm456_vm1 = vcmask 9216  }
   0xa   :  { %119 = vmatpush.msra.mxu1 %v616_v6  ;;  %343 = vmatpush.msrb.mxu0 %v582_v0  ;;  %v669_v12 = vld [vmem:[%s901_s1 + $0x30] sm:$0xff]  ;;  %v678_v13 = vld [vmem:[%s901_s1 + $0x28] sm:$0xff]  ;;  %v687_v14 = vld [vmem:[%s901_s1 + $0x20] sm:$0xff]  ;;  %s463_s15 = sshll.u32 %s558_s14, 4  ;;  %s465_s18 = sshll.u32 %s903_s3, 4  ;;  %s464_s15 = int_to_ptr.vmem [resolvable:$true] %s463_s15  ;;  %s466_s18 = int_to_ptr.hbm [resolvable:$true] %s465_s18 }
   0xb   :  { %157 = vmatpush.msra.mxu2 %v616_v6  ;;  %195 = vmatpush.msra.mxu3 %v616_v6  ;;  %v696_v15 = vld [vmem:[%s901_s1 + $0x18] sm:$0xff]  ;;  %v705_v16 = vld [vmem:[%s901_s1 + $0x10] sm:$0xff]  ;;  %v714_v17 = vld [vmem:[%s901_s1 + $0x8] sm:$0xff]  ;;  %s555_s1 = smov 32  }
   0xc   :  { %120 = vmatpush.msra.mxu1 %v624_v7  ;;  %344 = vmatpush.msrb.mxu0 %v587_v1  ;;  %v16_v25 = vld [vmem:[%s900_s0 + $0x8] sm:$0xff]  ;;  %v17_v42 = vld [vmem:[%s900_s0 + $0x10] sm:$0xff]  ;;  %v18_v59 = vld [vmem:[%s900_s0 + $0x18] sm:$0xff] }
   0xd   :  { %158 = vmatpush.msra.mxu2 %v624_v7  ;;  %196 = vmatpush.msra.mxu3 %v624_v7 }
   0xe   :  { %121 = vmatpush.msra.mxu1 %v633_v8  ;;  %345 = vmatpush.msrb.mxu0 %v594_v2 }
   0xf   :  { %159 = vmatpush.msra.mxu2 %v633_v8  ;;  %197 = vmatpush.msra.mxu3 %v633_v8 }
  0x10   :  { %122 = vmatpush.msra.mxu1 %v642_v9  ;;  %346 = vmatpush.msrb.mxu0 %v602_v3 }
  0x11   :  { %160 = vmatpush.msra.mxu2 %v642_v9  ;;  %198 = vmatpush.msra.mxu3 %v642_v9 }
  0x12   :  { %123 = vmatpush.msra.mxu1 %v651_v10  ;;  %347 = vmatpush.msrb.mxu0 %v616_v6 }
  0x13   :  { %161 = vmatpush.msra.mxu2 %v651_v10  ;;  %199 = vmatpush.msra.mxu3 %v651_v10 }
  0x14   :  { %124 = vmatpush.msra.mxu1 %v660_v11  ;;  %348 = vmatpush.msrb.mxu0 %v624_v7 }
  0x15   :  { %162 = vmatpush.msra.mxu2 %v660_v11  ;;  %200 = vmatpush.msra.mxu3 %v660_v11 }
  0x16   :  { %125 = vmatpush.msra.mxu1 %v669_v12  ;;  %349 = vmatpush.msrb.mxu0 %v633_v8 }
  0x17   :  { %163 = vmatpush.msra.mxu2 %v669_v12  ;;  %201 = vmatpush.msra.mxu3 %v669_v12 }
  0x18   :  { %126 = vmatpush.msra.mxu1 %v678_v13  ;;  %350 = vmatpush.msrb.mxu0 %v642_v9 }
  0x19   :  { %164 = vmatpush.msra.mxu2 %v678_v13  ;;  %202 = vmatpush.msra.mxu3 %v678_v13 }
  0x1a   :  { %127 = vmatpush.msra.mxu1 %v687_v14  ;;  %351 = vmatpush.msrb.mxu0 %v651_v10 }
  0x1b   :  { %165 = vmatpush.msra.mxu2 %v687_v14  ;;  %203 = vmatpush.msra.mxu3 %v687_v14 }
  0x1c   :  { %128 = vmatpush.msra.mxu1 %v696_v15  ;;  %352 = vmatpush.msrb.mxu0 %v660_v11 }
  0x1d   :  { %166 = vmatpush.msra.mxu2 %v696_v15  ;;  %204 = vmatpush.msra.mxu3 %v696_v15 }
  0x1e   :  { %129 = vmatpush.msra.mxu1 %v705_v16  ;;  %353 = vmatpush.msrb.mxu0 %v669_v12 }
  0x1f   :  { %167 = vmatpush.msra.mxu2 %v705_v16  ;;  %205 = vmatpush.msra.mxu3 %v705_v16 }
  0x20   :  { %130 = vmatpush.msra.mxu1 %v714_v17  ;;  %354 = vmatpush.msrb.mxu0 %v678_v13 }
  0x21   :  { %131 = vmatmul.f32.vlgmr.msra.gmra.mxu1 %v554_v18  ;;  %168 = vmatpush.msra.mxu2 %v714_v17 }
  0x22   :  { %206 = vmatpush.msra.mxu3 %v714_v17  ;;  %229 = vmatpush.msrb.mxu1 %v582_v0 }
  0x23   :  { %267 = vmatpush.msrb.mxu2 %v582_v0  ;;  %355 = vmatpush.msrb.mxu0 %v687_v14 }
  0x24   :  { %305 = vmatpush.msrb.mxu3 %v582_v0  ;;  %230 = vmatpush.msrb.mxu1 %v587_v1 }
  0x25   :  { %268 = vmatpush.msrb.mxu2 %v587_v1  ;;  %356 = vmatpush.msrb.mxu0 %v696_v15 }
  0x26   :  { %306 = vmatpush.msrb.mxu3 %v587_v1  ;;  %231 = vmatpush.msrb.mxu1 %v594_v2 }
  0x27   :  { %269 = vmatpush.msrb.mxu2 %v594_v2  ;;  %357 = vmatpush.msrb.mxu0 %v705_v16 }
  0x28   :  { %307 = vmatpush.msrb.mxu3 %v594_v2  ;;  %232 = vmatpush.msrb.mxu1 %v602_v3 }
  0x29   :  { %270 = vmatpush.msrb.mxu2 %v602_v3  ;;  %358 = vmatpush.msrb.mxu0 %v714_v17 }
  0x2a   :  { %308 = vmatpush.msrb.mxu3 %v602_v3  ;;  %233 = vmatpush.msrb.mxu1 %v616_v6 }
  0x2b   :  { %271 = vmatpush.msrb.mxu2 %v616_v6  ;;  %475 = vmatmul.msk.f32.gmra.mxu0 %vm24_vm0, %v16_v25 }
  0x2c   :  { %309 = vmatpush.msrb.mxu3 %v616_v6  ;;  %234 = vmatpush.msrb.mxu1 %v624_v7 }
  0x2d   :  { %272 = vmatpush.msrb.mxu2 %v624_v7 }
  0x2e   :  { %310 = vmatpush.msrb.mxu3 %v624_v7  ;;  %235 = vmatpush.msrb.mxu1 %v633_v8 }
  0x2f   :  { %273 = vmatpush.msrb.mxu2 %v633_v8 }
  0x30   :  { %311 = vmatpush.msrb.mxu3 %v633_v8  ;;  %236 = vmatpush.msrb.mxu1 %v642_v9 }
  0x31   :  { %274 = vmatpush.msrb.mxu2 %v642_v9 }
  0x32   :  { %312 = vmatpush.msrb.mxu3 %v642_v9  ;;  %237 = vmatpush.msrb.mxu1 %v651_v10 }
  0x33   :  { %275 = vmatpush.msrb.mxu2 %v651_v10  ;;  %476 = vmatmul.msk.f32.gmra.mxu0 %vm24_vm0, %v17_v42 }
  0x34   :  { %313 = vmatpush.msrb.mxu3 %v651_v10  ;;  %238 = vmatpush.msrb.mxu1 %v660_v11 }
  0x35   :  { %276 = vmatpush.msrb.mxu2 %v660_v11 }
  0x36   :  { %314 = vmatpush.msrb.mxu3 %v660_v11  ;;  %239 = vmatpush.msrb.mxu1 %v669_v12 }
  0x37   :  { %277 = vmatpush.msrb.mxu2 %v669_v12 }
  0x38   :  { %315 = vmatpush.msrb.mxu3 %v669_v12  ;;  %240 = vmatpush.msrb.mxu1 %v678_v13 }
  0x39   :  { %278 = vmatpush.msrb.mxu2 %v678_v13 }
  0x3a   :  { %316 = vmatpush.msrb.mxu3 %v678_v13  ;;  %241 = vmatpush.msrb.mxu1 %v687_v14 }
  0x3b   :  { %279 = vmatpush.msrb.mxu2 %v687_v14  ;;  %477 = vmatmul.msk.f32.gmra.mxu0 %vm24_vm0, %v18_v59 }
  0x3c   :  { %317 = vmatpush.msrb.mxu3 %v687_v14  ;;  %242 = vmatpush.msrb.mxu1 %v696_v15 }
  0x3d   :  { %280 = vmatpush.msrb.mxu2 %v696_v15 }
  0x3e   :  { %318 = vmatpush.msrb.mxu3 %v696_v15  ;;  %243 = vmatpush.msrb.mxu1 %v705_v16 }
  0x3f   :  { %281 = vmatpush.msrb.mxu2 %v705_v16 }
  0x40   :  { %319 = vmatpush.msrb.mxu3 %v705_v16  ;;  %244 = vmatpush.msrb.mxu1 %v714_v17 }
  0x41   :  { %282 = vmatpush.msrb.mxu2 %v714_v17 }
  0x42   :  { %320 = vmatpush.msrb.mxu3 %v714_v17  ;;  %381 = vmatpush.msra.mxu1 %v582_v0 }
  0x44   :  { %382 = vmatpush.msra.mxu1 %v587_v1 }
  0x46   :  { %383 = vmatpush.msra.mxu1 %v594_v2 }
  0x48   :  { %384 = vmatpush.msra.mxu1 %v602_v3 }
  0x4a   :  { %385 = vmatpush.msra.mxu1 %v616_v6 }
  0x4c   :  { %386 = vmatpush.msra.mxu1 %v624_v7 }
  0x4e   :  { %387 = vmatpush.msra.mxu1 %v633_v8 }
  0x50   :  { %388 = vmatpush.msra.mxu1 %v642_v9 }
  0x52   :  { %389 = vmatpush.msra.mxu1 %v651_v10 }
  0x54   :  { %390 = vmatpush.msra.mxu1 %v660_v11 }
  0x56   :  { %391 = vmatpush.msra.mxu1 %v669_v12  ;;  %v19_v12 = vld [vmem:[%s900_s0 + $0x20] sm:$0xff] }
  0x57   :  { %478 = vmatmul.msk.f32.gmra.mxu0 %vm24_vm0, %v19_v12 }
  0x58   :  { %392 = vmatpush.msra.mxu1 %v678_v13 }
  0x5a   :  { %393 = vmatpush.msra.mxu1 %v687_v14 }
  0x5c   :  { %394 = vmatpush.msra.mxu1 %v696_v15 }
  0x5e   :  { %395 = vmatpush.msra.mxu1 %v705_v16 }
  0x60   :  { %396 = vmatpush.msra.mxu1 %v714_v17 }
  0x85   :  { %v66_v19 = vpop.f32.mrf.mxu0 }
  0x9e   :  { %v132_v20 = vpop.f32.mrf.mxu1 }
  0x9f   :  { %v135_v21 = vadd.f32 %v132_v20, %v66_v19 }
  0xa1   :  { %496 = vtanh.f32 %v135_v21 }
  0xa7   :  { %v497_v22 = vpop.eup %496 }
  0xa8   :  { %v137_v23 = vmul.f32 0.5, %v497_v22  ;;  %v69_v36 = vpop.f32.mrf.mxu0 }
  0xaa   :  { %v138_v24 = vadd.f32 0.5, %v137_v23 }
  0xac   :  { %143 = vrot.lane.b32.xlu1 %v138_v24, %s555_s1  ;;  %141 = vrot.lane.b32.xlu0 %v138_v24, %s556_s21 }
  0xb0   :  { %v72_v53 = vpop.f32.mrf.mxu0 }
  0xb4   :  { %139 = vrot.lane.b32.xlu0 %v138_v24, %s557_s22 }
  0xb8   :  { %v75_v6 = vpop.f32.mrf.mxu0 }
  0xd4   :  { %v78_v23 = vpop.f32.mrf.mxu0 }
 0x11e   :  { %v142_v26 = vpop.permute.xlu0 %141  ;;  %v144_v34 = vpop.permute.xlu1 %143 }
 0x11f   :  { %v146_v27 = vmul.f32 2.0, %v142_v26 }
 0x121   :  { %v482_v28 = vadd.f32 -1.0, %v146_v27 }
 0x123   :  { %v148_v30 = vmul.f32 %v482_v28, %v138_v24 }
 0x126   :  { %v140_v29 = vpop.permute.xlu0 %139 }
 0x127   :  { %v145_v31 = vmul.f32 0.0, %v140_v29  ;;  %v20_v29 = vld [vmem:[%s900_s0 + $0x28] sm:$0xff] }
 0x128   :  { %479 = vmatmul.msk.f32.gmra.mxu0 %vm24_vm0, %v20_v29  ;;  %v420_v29 = vld [vmem:[%s902_s2 + $0x10] sm:$0xff] }
 0x129   :  { %v149_v32 = vadd.f32 %v148_v30, %v145_v31 }
 0x12b   :  { %498 = vtanh.f32 %v149_v32 }
 0x131   :  { %v499_v33 = vpop.eup %498 }
 0x132   :  { %v151_v35 = vmul.f32 %v499_v33, %v144_v34 }
 0x134   :  { %169 = vmatmul.f32.vlgmr.msra.gmra.mxu2 %v151_v35 }
 0x1b7   :  { %v170_v37 = vpop.f32.mrf.mxu2 }
 0x1b8   :  { %v173_v38 = vadd.f32 %v170_v37, %v69_v36 }
 0x1ba   :  { %500 = vtanh.f32 %v173_v38 }
 0x1c0   :  { %v501_v39 = vpop.eup %500 }
 0x1c1   :  { %v175_v40 = vmul.f32 0.5, %v501_v39 }
 0x1c3   :  { %v176_v41 = vadd.f32 0.5, %v175_v40  ;;  %v81_v40 = vpop.f32.mrf.mxu0 }
 0x1c5   :  { %177 = vrot.lane.b32.xlu2 %v176_v41, %s557_s22  ;;  %179 = vrot.lane.b32.xlu1 %v176_v41, %s556_s21 }
 0x1cd   :  { %181 = vrot.lane.b32.xlu2 %v176_v41, %s555_s1 }
 0x21f   :  { %v178_v45 = vpop.permute.xlu2 %177 }
 0x220   :  { %v183_v47 = vmul.f32 %v178_v45, %v149_v32 }
 0x227   :  { %v182_v51 = vpop.permute.xlu2 %181 }
 0x237   :  { %v180_v43 = vpop.permute.xlu1 %179 }
 0x238   :  { %v184_v44 = vmul.f32 2.0, %v180_v43 }
 0x23a   :  { %v483_v46 = vadd.f32 -1.0, %v184_v44 }
 0x23c   :  { %v186_v48 = vmul.f32 %v483_v46, %v176_v41  ;;  %v21_v46 = vld [vmem:[%s900_s0 + $0x30] sm:$0xff] }
 0x23d   :  { %480 = vmatmul.msk.f32.gmra.mxu0 %vm24_vm0, %v21_v46 }
 0x23e   :  { %v187_v49 = vadd.f32 %v186_v48, %v183_v47  ;;  %v22_v47 = vld [vmem:[%s900_s0 + $0x38] sm:$0xff] }
 0x240   :  { %502 = vtanh.f32 %v187_v49 }
 0x245   :  { %481 = vmatmul.msk.f32.gmra.mxu0 %vm24_vm0, %v22_v47 }
 0x246   :  { %v503_v50 = vpop.eup %502 }
 0x247   :  { %v189_v52 = vmul.f32 %v503_v50, %v182_v51 }
 0x249   :  { %207 = vmatmul.f32.vlgmr.msra.gmra.mxu3 %v189_v52 }
 0x2cc   :  { %v208_v54 = vpop.f32.mrf.mxu3 }
 0x2cd   :  { %v211_v55 = vadd.f32 %v208_v54, %v72_v53 }
 0x2cf   :  { %504 = vtanh.f32 %v211_v55 }
 0x2d5   :  { %v505_v56 = vpop.eup %504 }
 0x2d6   :  { %v213_v57 = vmul.f32 0.5, %v505_v56 }
 0x2d8   :  { %v214_v58 = vadd.f32 0.5, %v213_v57 }
 0x2da   :  { %219 = vrot.lane.b32.xlu2 %v214_v58, %s555_s1  ;;  %215 = vrot.lane.b32.xlu1 %v214_v58, %s557_s22 }
 0x2db   :  { %217 = vrot.lane.b32.xlu0 %v214_v58, %s556_s21 }
 0x334   :  { %v220_v4 = vpop.permute.xlu2 %219 }
 0x34c   :  { %v216_v62 = vpop.permute.xlu1 %215 }
 0x34d   :  { %v218_v60 = vpop.permute.xlu0 %217  ;;  %v221_v0 = vmul.f32 %v216_v62, %v187_v49 }
 0x34e   :  { %v222_v61 = vmul.f32 2.0, %v218_v60 }
 0x350   :  { %v484_v63 = vadd.f32 -1.0, %v222_v61 }
 0x352   :  { %v224_v1 = vmul.f32 %v484_v63, %v214_v58  ;;  %v84_v58 = vpop.f32.mrf.mxu0 }
 0x354   :  { %v225_v2 = vadd.f32 %v224_v1, %v221_v0 }
 0x356   :  { %506 = vtanh.f32 %v225_v2 }
 0x35a   :  { %v87_v59 = vpop.f32.mrf.mxu0 }
 0x35c   :  { %v507_v3 = vpop.eup %506 }
 0x35d   :  { %v227_v5 = vmul.f32 %v507_v3, %v220_v4 }
 0x35f   :  { %245 = vmatmul.f32.vlgmr.msrb.gmra.mxu1 %v227_v5 }
 0x3dc   :  { %v246_v7 = vpop.f32.mrf.mxu1 }
 0x3dd   :  { %v249_v8 = vadd.f32 %v246_v7, %v75_v6 }
 0x3df   :  { %508 = vtanh.f32 %v249_v8 }
 0x3e5   :  { %v509_v9 = vpop.eup %508 }
 0x3e6   :  { %v251_v10 = vmul.f32 0.5, %v509_v9 }
 0x3e8   :  { %v252_v11 = vadd.f32 0.5, %v251_v10 }
 0x3ea   :  { %257 = vrot.lane.b32.xlu2 %v252_v11, %s555_s1  ;;  %253 = vrot.lane.b32.xlu1 %v252_v11, %s557_s22 }
 0x3eb   :  { %255 = vrot.lane.b32.xlu0 %v252_v11, %s556_s21 }
 0x444   :  { %v258_v21 = vpop.permute.xlu2 %257 }
 0x45c   :  { %v254_v15 = vpop.permute.xlu1 %253 }
 0x45d   :  { %v256_v13 = vpop.permute.xlu0 %255  ;;  %v259_v17 = vmul.f32 %v254_v15, %v225_v2 }
 0x45e   :  { %v260_v14 = vmul.f32 2.0, %v256_v13 }
 0x460   :  { %v485_v16 = vadd.f32 -1.0, %v260_v14 }
 0x462   :  { %v262_v18 = vmul.f32 %v485_v16, %v252_v11  ;;  %v433_v16 = vld [vmem:[%s902_s2 + $0x78] sm:$0xff] }
 0x463   :  { %436 = vmatpush.msra.mxu2 %v433_v16 }
 0x464   :  { %v263_v19 = vadd.f32 %v262_v18, %v259_v17  ;;  %v432_v17 = vld [vmem:[%s902_s2 + $0x70] sm:$0xff]  ;;  %v431_v18 = vld [vmem:[%s902_s2 + $0x68] sm:$0xff] }
 0x465   :  { %437 = vmatpush.msra.mxu2 %v432_v17 }
 0x466   :  { %510 = vtanh.f32 %v263_v19 }
 0x467   :  { %438 = vmatpush.msra.mxu2 %v431_v18 }
 0x46c   :  { %v511_v20 = vpop.eup %510 }
 0x46d   :  { %v265_v22 = vmul.f32 %v511_v20, %v258_v21  ;;  %v429_v20 = vld [vmem:[%s902_s2 + $0x58] sm:$0xff]  ;;  %v428_v21 = vld [vmem:[%s902_s2 + $0x50] sm:$0xff] }
 0x46f   :  { %283 = vmatmul.f32.vlgmr.msrb.gmra.mxu2 %v265_v22  ;;  %v427_v22 = vld [vmem:[%s902_s2 + $0x48] sm:$0xff] }
 0x4f2   :  { %v284_v24 = vpop.f32.mrf.mxu2 }
 0x4f3   :  { %v287_v25 = vadd.f32 %v284_v24, %v78_v23  ;;  %v426_v23 = vld [vmem:[%s902_s2 + $0x40] sm:$0xff]  ;;  %v425_v24 = vld [vmem:[%s902_s2 + $0x38] sm:$0xff] }
 0x4f5   :  { %512 = vtanh.f32 %v287_v25  ;;  %v424_v25 = vld [vmem:[%s902_s2 + $0x30] sm:$0xff] }
 0x4fb   :  { %v513_v26 = vpop.eup %512 }
 0x4fc   :  { %v289_v27 = vmul.f32 0.5, %v513_v26  ;;  %v423_v26 = vld [vmem:[%s902_s2 + $0x28] sm:$0xff] }
 0x4fe   :  { %v290_v28 = vadd.f32 0.5, %v289_v27  ;;  %v422_v27 = vld [vmem:[%s902_s2 + $0x20] sm:$0xff] }
 0x500   :  { %295 = vrot.lane.b32.xlu2 %v290_v28, %s555_s1  ;;  %291 = vrot.lane.b32.xlu1 %v290_v28, %s557_s22 }
 0x501   :  { %293 = vrot.lane.b32.xlu0 %v290_v28, %s556_s21 }
 0x55a   :  { %v296_v38 = vpop.permute.xlu2 %295 }
 0x572   :  { %v292_v32 = vpop.permute.xlu1 %291 }
 0x573   :  { %v294_v30 = vpop.permute.xlu0 %293  ;;  %v297_v34 = vmul.f32 %v292_v32, %v263_v19  ;;  %v430_v19 = vld [vmem:[%s902_s2 + $0x60] sm:$0xff] }
 0x574   :  { %v298_v31 = vmul.f32 2.0, %v294_v30  ;;  %439 = vmatpush.msra.mxu2 %v430_v19  ;;  %v419_v30 = vld [vmem:[%s902_s2 + $0x8] sm:$0xff] }
 0x576   :  { %v486_v33 = vadd.f32 -1.0, %v298_v31  ;;  %440 = vmatpush.msra.mxu2 %v429_v20  ;;  %v418_v31 = vld [vmem:[%s902_s2] sm:$0xff] }
 0x578   :  { %v300_v35 = vmul.f32 %v486_v33, %v290_v28  ;;  %441 = vmatpush.msra.mxu2 %v428_v21  ;;  %v421_v28 = vld [vmem:[%s902_s2 + $0x18] sm:$0xff] }
 0x57a   :  { %v301_v36 = vadd.f32 %v300_v35, %v297_v34  ;;  %442 = vmatpush.msra.mxu2 %v427_v22 }
 0x57c   :  { %514 = vtanh.f32 %v301_v36  ;;  %443 = vmatpush.msra.mxu2 %v426_v23 }
 0x57e   :  { %444 = vmatpush.msra.mxu2 %v425_v24 }
 0x580   :  { %445 = vmatpush.msra.mxu2 %v424_v25 }
 0x582   :  { %v515_v37 = vpop.eup %514  ;;  %446 = vmatpush.msra.mxu2 %v423_v26 }
 0x583   :  { %v303_v39 = vmul.f32 %v515_v37, %v296_v38 }
 0x584   :  { %447 = vmatpush.msra.mxu2 %v422_v27 }
 0x585   :  { %321 = vmatmul.f32.vlgmr.msrb.gmra.mxu3 %v303_v39 }
 0x586   :  { %448 = vmatpush.msra.mxu2 %v421_v28 }
 0x588   :  { %449 = vmatpush.msra.mxu2 %v420_v29 }
 0x58a   :  { %450 = vmatpush.msra.mxu2 %v419_v30 }
 0x58c   :  { %451 = vmatpush.msra.mxu2 %v418_v31 }
 0x608   :  { %v322_v41 = vpop.f32.mrf.mxu3 }
 0x609   :  { %v325_v42 = vadd.f32 %v322_v41, %v81_v40 }
 0x60b   :  { %516 = vtanh.f32 %v325_v42  ;;  %v495_v42 = vld [vmem:[%s902_s2 + $0x80] ss:$0 sm:$0xff] }
 0x611   :  { %v517_v43 = vpop.eup %516 }
 0x612   :  { %v327_v44 = vmul.f32 0.5, %v517_v43 }
 0x614   :  { %v328_v45 = vadd.f32 0.5, %v327_v44 }
 0x616   :  { %333 = vrot.lane.b32.xlu2 %v328_v45, %s555_s1  ;;  %329 = vrot.lane.b32.xlu1 %v328_v45, %s557_s22 }
 0x617   :  { %331 = vrot.lane.b32.xlu0 %v328_v45, %s556_s21 }
 0x670   :  { %v334_v56 = vpop.permute.xlu2 %333 }
 0x688   :  { %v330_v50 = vpop.permute.xlu1 %329 }
 0x689   :  { %v332_v48 = vpop.permute.xlu0 %331  ;;  %v335_v52 = vmul.f32 %v330_v50, %v301_v36 }
 0x68a   :  { %v336_v49 = vmul.f32 2.0, %v332_v48 }
 0x68c   :  { %v487_v51 = vadd.f32 -1.0, %v336_v49 }
 0x68e   :  { %v338_v53 = vmul.f32 %v487_v51, %v328_v45 }
 0x690   :  { %v339_v54 = vadd.f32 %v338_v53, %v335_v52 }
 0x692   :  { %518 = vtanh.f32 %v339_v54 }
 0x698   :  { %v519_v55 = vpop.eup %518 }
 0x699   :  { %v341_v57 = vmul.f32 %v519_v55, %v334_v56 }
 0x69b   :  { %359 = vmatmul.f32.vlgmr.msrb.gmra.mxu0 %v341_v57 }
 0x718   :  { %v360_v60 = vpop.f32.mrf.mxu0 }
 0x719   :  { %v363_v61 = vadd.f32 %v360_v60, %v84_v58 }
 0x71b   :  { %520 = vtanh.f32 %v363_v61 }
 0x721   :  { %v521_v62 = vpop.eup %520 }
 0x722   :  { %v365_v63 = vmul.f32 0.5, %v521_v62 }
 0x724   :  { %v366_v0 = vadd.f32 0.5, %v365_v63 }
 0x726   :  { %371 = vrot.lane.b32.xlu2 %v366_v0, %s555_s1  ;;  %367 = vrot.lane.b32.xlu1 %v366_v0, %s557_s22 }
 0x727   :  { %369 = vrot.lane.b32.xlu0 %v366_v0, %s556_s21 }
 0x780   :  { %v372_v9 = vpop.permute.xlu2 %371 }
 0x798   :  { %v368_v3 = vpop.permute.xlu1 %367 }
 0x799   :  { %v370_v1 = vpop.permute.xlu0 %369  ;;  %v373_v5 = vmul.f32 %v368_v3, %v339_v54 }
 0x79a   :  { %v374_v2 = vmul.f32 2.0, %v370_v1 }
 0x79c   :  { %v488_v4 = vadd.f32 -1.0, %v374_v2 }
 0x79e   :  { %v376_v6 = vmul.f32 %v488_v4, %v366_v0 }
 0x7a0   :  { %v377_v7 = vadd.f32 %v376_v6, %v373_v5 }
 0x7a2   :  { %522 = vtanh.f32 %v377_v7 }
 0x7a8   :  { %v523_v8 = vpop.eup %522 }
 0x7a9   :  { %v379_v10 = vmul.f32 %v523_v8, %v372_v9 }
 0x7ab   :  { %397 = vmatmul.f32.vlgmr.msra.gmra.mxu1 %v379_v10 }
 0x828   :  { %v398_v11 = vpop.f32.mrf.mxu1 }
 0x829   :  { %v401_v12 = vadd.f32 %v398_v11, %v87_v59 }
 0x82b   :  { %524 = vtanh.f32 %v401_v12 }
 0x831   :  { %v525_v13 = vpop.eup %524 }
 0x832   :  { %v403_v14 = vmul.f32 0.5, %v525_v13 }
 0x834   :  { %v404_v15 = vadd.f32 0.5, %v403_v14 }
 0x836   :  { %409 = vrot.lane.b32.xlu2 %v404_v15, %s555_s1  ;;  %405 = vrot.lane.b32.xlu1 %v404_v15, %s557_s22 }
 0x837   :  { %407 = vrot.lane.b32.xlu0 %v404_v15, %s556_s21 }
 0x890   :  { %v410_v40 = vpop.permute.xlu2 %409 }
 0x8a8   :  { %v406_v34 = vpop.permute.xlu1 %405 }
 0x8a9   :  { %v408_v32 = vpop.permute.xlu0 %407  ;;  %v411_v36 = vmul.f32 %v406_v34, %v377_v7 }
 0x8aa   :  { %v412_v33 = vmul.f32 2.0, %v408_v32 }
 0x8ac   :  { %v489_v35 = vadd.f32 -1.0, %v412_v33 }
 0x8ae   :  { %v414_v37 = vmul.f32 %v489_v35, %v404_v15 }
 0x8b0   :  { %v415_v38 = vadd.f32 %v414_v37, %v411_v36 }
 0x8b2   :  { %526 = vtanh.f32 %v415_v38 }
 0x8b8   :  { %v527_v39 = vpop.eup %526 }
 0x8b9   :  { %v417_v41 = vmul.f32 %v527_v39, %v410_v40 }
 0x8bb   :  { %452 = vmatmul.f32.vlgmr.msra.gmra.mxu2 %v417_v41 }
 0x93e   :  { %v453_v43 = vpop.f32.mrf.mxu2 }
 0x93f   :  { %v454_v44 = vadd.f32 %v495_v42, %v453_v43 }
 0x941   :  { %457 = vst.msk [vmem:[#allocation3] sm:$0x3] %vm456_vm1, %v454_v44 }
 0x942   :  { %468 = dma.vmem_to_hbm [thread:$0]  %s464_s15, 32, %s466_s18, [#allocation4]  }
 0x943   :  { %552 = dma.done.wait [#allocation4], 32  }
 0x944   :  { %553 = vsyncadd [#allocation4], 4294967264 }
 0x945   :  { %473 = vsyncpa [#allocation4], 1 }

</bundles_post_ra>
